<compile_context>
chip_gen: v7x
topology: tpu7x:2x2x1
jax: 0.10.0
libtpu: 0.0.40
codegen_flags: <defaults>
</compile_context>

<pallas_src>
import functools

import jax
import jax.numpy as jnp
from jax import lax
from jax.experimental import pallas as pl
from jax.experimental.pallas import tpu as pltpu

_LANES = 128
_SUBLANES = 8


def _round_up(x, m):
    return ((x + m - 1) // m) * m


def _cdiv(a, b):
    return -(-a // b)


def _fold8(x):
    """(R, 128) f32 -> (8, 128) partial sum using only VPU adds (R % 8 == 0)."""
    r = x.shape[0] // _SUBLANES
    if r == 1:
        return x
    return jnp.sum(x.reshape(r, _SUBLANES, _LANES), axis=0)


def _flat_iota(n_rows):
    """(n_rows, 128) int32 flat element index (row-major)."""
    rows = lax.broadcasted_iota(jnp.int32, (n_rows, _LANES), 0)
    lanes = lax.broadcasted_iota(jnp.int32, (n_rows, _LANES), 1)
    return rows * _LANES + lanes


# --------------------------------------------------------------------------
# Fast path: whole score maps resident in VMEM, one fused kernel.
# --------------------------------------------------------------------------
def _fused_kernel(real_ref, fdis_ref, fgen_ref, d_ref, g_ref,
                  *, pred_type, n_total):
    real = real_ref[...].astype(jnp.float32)
    fdis = fdis_ref[...].astype(jnp.float32)
    fgen = fgen_ref[...].astype(jnp.float32)
    mask = _flat_iota(real.shape[0]) < n_total   # masks pad rows/lanes
    inv_n = 1.0 / float(n_total)

    if pred_type == 'ragan':
        real_mean = jnp.sum(jnp.where(mask, real, 0.0)) * inv_n
        fdis_mean = jnp.sum(jnp.where(mask, fdis, 0.0)) * inv_n
        fgen_mean = jnp.sum(jnp.where(mask, fgen, 0.0)) * inv_n
        d_t = (jnp.maximum((1.0 + fdis_mean) - real, 0.0)
               + jnp.maximum((1.0 - real_mean) + fdis, 0.0))
        g_t = (jnp.maximum((1.0 + real_mean) - fgen, 0.0)
               + jnp.maximum((1.0 - fgen_mean) + real, 0.0))
    elif pred_type == 'rgan':
        d_t = (jnp.maximum(1.0 - (real - fdis), 0.0)
               + jnp.maximum(1.0 + (fdis - real), 0.0))
        g_t = (jnp.maximum(1.0 - (fgen - real), 0.0)
               + jnp.maximum(1.0 + (real - fgen), 0.0))
    else:  # 'gan': G term is just -mean(fgen); emit the raw fgen sum partial.
        d_t = jnp.maximum(1.0 - real, 0.0) + jnp.maximum(1.0 + fdis, 0.0)
        g_t = fgen

    d_ref[...] = _fold8(jnp.where(mask, d_t, 0.0))
    g_ref[...] = _fold8(jnp.where(mask, g_t, 0.0))


# --------------------------------------------------------------------------
# Streaming path kernels: (tile_r, 128) lane-dense tiles, 64-row chunked
# incremental folding, cdiv grid with a flat-index tail mask.
# --------------------------------------------------------------------------
def _partial_sum_kernel(*refs, n_inputs, n_total, tile_r, chunk_r):
    """Per-tile masked partial sums of `n_inputs` score slabs."""
    in_refs = refs[:n_inputs]
    out_refs = refs[n_inputs:]
    base = pl.program_id(0) * tile_r
    flat0 = _flat_iota(chunk_r)
    n_chunks = tile_r // chunk_r

    def body(i, accs):
        r0 = pl.multiple_of(i * chunk_r, chunk_r)
        mask = (flat0 + (base + r0) * _LANES) < n_total
        new = []
        for ref, acc in zip(in_refs, accs):
            x = ref[pl.ds(r0, chunk_r), :].astype(jnp.float32)
            new.append(acc + _fold8(jnp.where(mask, x, 0.0)))
        return tuple(new)

    init = tuple(jnp.zeros((_SUBLANES, _LANES), jnp.float32)
                 for _ in range(n_inputs))
    accs = lax.fori_loop(0, n_chunks, body, init, unroll=True)
    for out_ref, acc in zip(out_refs, accs):
        out_ref[0] = acc


def _partial_hinge_kernel(*refs, pred_type, n_total, tile_r, chunk_r):
    """Per-tile masked partial sums of the combined hinge terms.

    'ragan' additionally receives an untiled SMEM (4,) constants input:
      c0 = 1 + mean(fake_dis), c1 = 1 - mean(real),
      c2 = 1 + mean(real),     c3 = 1 - mean(fake_gen)
    """
    if pred_type == 'gan':
        real_ref, fdis_ref, d_ref = refs
        fgen_ref = g_ref = None
        c = None
    elif pred_type == 'rgan':
        real_ref, fdis_ref, fgen_ref, d_ref, g_ref = refs
        c = None
    else:  # 'ragan'
        consts_ref, real_ref, fdis_ref, fgen_ref, d_ref, g_ref = refs
        c = (consts_ref[0], consts_ref[1], consts_ref[2], consts_ref[3])

    base = pl.program_id(0) * tile_r
    flat0 = _flat_iota(chunk_r)
    n_chunks = tile_r // chunk_r

    def body(i, carry):
        r0 = pl.multiple_of(i * chunk_r, chunk_r)
        mask = (flat0 + (base + r0) * _LANES) < n_total
        real = real_ref[pl.ds(r0, chunk_r), :].astype(jnp.float32)
        fdis = fdis_ref[pl.ds(r0, chunk_r), :].astype(jnp.float32)
        if pred_type == 'gan':
            d_t = jnp.maximum(1.0 - real, 0.0) + jnp.maximum(1.0 + fdis, 0.0)
            return carry + _fold8(jnp.where(mask, d_t, 0.0))
        fgen = fgen_ref[pl.ds(r0, chunk_r), :].astype(jnp.float32)
        if pred_type == 'rgan':
            d_t = (jnp.maximum(1.0 - (real - fdis), 0.0)
                   + jnp.maximum(1.0 + (fdis - real), 0.0))
            g_t = (jnp.maximum(1.0 - (fgen - real), 0.0)
                   + jnp.maximum(1.0 + (real - fgen), 0.0))
        else:  # 'ragan'
            c0, c1, c2, c3 = c
            d_t = jnp.maximum(c0 - real, 0.0) + jnp.maximum(c1 + fdis, 0.0)
            g_t = jnp.maximum(c2 - fgen, 0.0) + jnp.maximum(c3 + real, 0.0)
        d_acc, g_acc = carry
        return (d_acc + _fold8(jnp.where(mask, d_t, 0.0)),
                g_acc + _fold8(jnp.where(mask, g_t, 0.0)))

    zeros = jnp.zeros((_SUBLANES, _LANES), jnp.float32)
    if pred_type == 'gan':
        d_acc = lax.fori_loop(0, n_chunks, body, zeros, unroll=True)
        d_ref[0] = d_acc
    else:
        d_acc, g_acc = lax.fori_loop(0, n_chunks, body, (zeros, zeros),
                                     unroll=True)
        d_ref[0] = d_acc
        g_ref[0] = g_acc


# --------------------------------------------------------------------------
# Wrapper
# --------------------------------------------------------------------------
def _to_lane_slab(x, row_mult):
    """Flatten to a lane-dense (rows, 128) slab; minimal zero pad (masked
    in-kernel, so it never biases means or hinge sums)."""
    flat = x.reshape(-1)
    n = flat.shape[0]
    rows = _cdiv(n, _LANES)
    rows_pad = _round_up(rows, row_mult)
    pad = rows_pad * _LANES - n
    if pad:
        flat = jnp.pad(flat, (0, pad))
    return flat.reshape(rows_pad, _LANES)


@functools.partial(jax.jit,
                   static_argnames=('pred_type', 'weight', 'fused_max_bytes'))
def adversarial_loss(real_scores, fake_scores_dis, fake_scores_gen, *,
                     pred_type: str = 'ragan', weight: float = 0.5,
                     fused_max_bytes: int = 4 * 1024 * 1024):
    """Returns (D_ADV, G_ADV) scalars, matching LossWrapper.forward."""
    assert pred_type in ('gan', 'rgan', 'ragan')
    assert real_scores.shape == fake_scores_dis.shape == fake_scores_gen.shape
    assert real_scores.dtype == fake_scores_dis.dtype == fake_scores_gen.dtype

    n_total = real_scores.size                 # TRUE global element count
    inv_n = 1.0 / float(n_total)
    weight = float(weight)
    itemsize = jnp.dtype(real_scores.dtype).itemsize
    pack = max(1, 4 // itemsize)               # 1 for f32, 2 for bf16
    row_mult = _SUBLANES * pack                # min sublane packing

    real2d = _to_lane_slab(real_scores, row_mult)
    fdis2d = _to_lane_slab(fake_scores_dis, row_mult)
    fgen2d = _to_lane_slab(fake_scores_gen, row_mult)
    rows_pad = real2d.shape[0]

    # ------------------ fast path: one fused, fully-resident kernel ---------
    if 3 * rows_pad * _LANES * 4 <= fused_max_bytes:
        kern = functools.partial(_fused_kernel, pred_type=pred_type,
                                 n_total=n_total)
        part = jax.ShapeDtypeStruct((_SUBLANES, _LANES), jnp.float32)
        d_part, g_part = pl.pallas_call(
            kern,
            out_shape=(part, part),
            in_specs=[pl.BlockSpec(memory_space=pltpu.VMEM)] * 3,
            out_specs=(pl.BlockSpec(memory_space=pltpu.VMEM),) * 2,
            compiler_params=pltpu.CompilerParams(
                vmem_limit_bytes=32 * 1024 * 1024),
        )(real2d, fdis2d, fgen2d)
        d_adv = jnp.sum(d_part) * inv_n * weight
        if pred_type == 'gan':
            g_adv = -(jnp.sum(g_part) * inv_n) * weight
        else:
            g_adv = jnp.sum(g_part) * inv_n * weight
        return d_adv, g_adv

    # ------------------ streaming path: pipelined lane-dense tiles ----------
    chunk_r = 64 * pack                        # 32 KiB/input/chunk, few vregs
    max_tile_rows = 2048 * pack                # ~1 MiB/input/buffer
    if rows_pad < chunk_r:
        chunk_r = rows_pad                     # still a multiple of row_mult
    # aim for >= ~8 tiles (v7x 2-TC sharding + pipeline amortization) without
    # tiles collapsing below chunk_r or extending far past the slab.
    target = _round_up(_cdiv(rows_pad, 8), chunk_r)
    tile_r = max(chunk_r, min(max_tile_rows, target))
    tile_r = min(tile_r, _round_up(rows_pad, chunk_r))
    n_tiles = _cdiv(rows_pad, tile_r)

    in_spec = pl.BlockSpec((tile_r, _LANES), lambda t: (t, 0))
    part_shape = jax.ShapeDtypeStruct((n_tiles, _SUBLANES, _LANES), jnp.float32)
    part_spec = pl.BlockSpec((1, _SUBLANES, _LANES), lambda t: (t, 0, 0))
    part_bytes = n_tiles * _SUBLANES * _LANES * 4
    slab_bytes = rows_pad * _LANES * itemsize
    cparams = pltpu.CompilerParams(
        dimension_semantics=("parallel",),     # independent tiles
        vmem_limit_bytes=32 * 1024 * 1024)

    # -------- pass 1: global sums (only where a mean is actually used) ------
    consts = None
    fgen_mean = None
    if pred_type == 'ragan':
        sum_kern = functools.partial(_partial_sum_kernel, n_inputs=3,
                                     n_total=n_total, tile_r=tile_r,
                                     chunk_r=chunk_r)
        pr, pf, pg = pl.pallas_call(
            sum_kern, grid=(n_tiles,),
            out_shape=(part_shape,) * 3,
            in_specs=[in_spec] * 3,
            out_specs=(part_spec,) * 3,
            compiler_params=cparams,
            cost_estimate=pl.CostEstimate(
                flops=3 * n_total, transcendentals=0,
                bytes_accessed=3 * slab_bytes + 3 * part_bytes),
        )(real2d, fdis2d, fgen2d)
        real_mean = jnp.sum(pr) * inv_n
        fdis_mean = jnp.sum(pf) * inv_n
        fgen_mean = jnp.sum(pg) * inv_n
        consts = jnp.stack([1.0 + fdis_mean, 1.0 - real_mean,
                            1.0 + real_mean, 1.0 - fgen_mean]
                           ).astype(jnp.float32)
    elif pred_type == 'gan':
        # only mean(fake_scores_gen) is consumed -> stream just that slab
        sum_kern = functools.partial(_partial_sum_kernel, n_inputs=1,
                                     n_total=n_total, tile_r=tile_r,
                                     chunk_r=chunk_r)
        (pg,) = pl.pallas_call(
            sum_kern, grid=(n_tiles,),
            out_shape=(part_shape,),
            in_specs=[in_spec],
            out_specs=(part_spec,),
            compiler_params=cparams,
            cost_estimate=pl.CostEstimate(
                flops=n_total, transcendentals=0,
                bytes_accessed=slab_bytes + part_bytes),
        )(fgen2d)
        fgen_mean = jnp.sum(pg) * inv_n

    # -------- pass 2: combined hinge partial sums ----------------------------
    hinge_kern = functools.partial(_partial_hinge_kernel, pred_type=pred_type,
                                   n_total=n_total, tile_r=tile_r,
                                   chunk_r=chunk_r)
    if pred_type == 'gan':
        (d_part,) = pl.pallas_call(
            hinge_kern, grid=(n_tiles,),
            out_shape=(part_shape,),
            in_specs=[in_spec, in_spec],
            out_specs=(part_spec,),
            compiler_params=cparams,
            cost_estimate=pl.CostEstimate(
                flops=6 * n_total, transcendentals=0,
                bytes_accessed=2 * slab_bytes + part_bytes),
        )(real2d, fdis2d)
        return jnp.sum(d_part) * inv_n * weight, -fgen_mean * weight

    if pred_type == 'ragan':
        in_specs = [pl.BlockSpec(memory_space=pltpu.SMEM),  # hoisted constants
                    in_spec, in_spec, in_spec]
        args = (consts, real2d, fdis2d, fgen2d)
    else:  # 'rgan'
        in_specs = [in_spec, in_spec, in_spec]
        args = (real2d, fdis2d, fgen2d)

    d_part, g_part = pl.pallas_call(
        hinge_kern, grid=(n_tiles,),
        out_shape=(part_shape, part_shape),
        in_specs=in_specs,
        out_specs=(part_spec, part_spec),
        compiler_params=cparams,
        cost_estimate=pl.CostEstimate(
            flops=12 * n_total, transcendentals=0,
            bytes_accessed=3 * slab_bytes + 2 * part_bytes),
    )(*args)
    d_adv = jnp.sum(d_part) * inv_n * weight
    g_adv = jnp.sum(g_part) * inv_n * weight
    return d_adv, g_adv


def loss_wrapper_forward(data_dict, losses_dict,
                         *, pred_type: str = 'ragan', weight: float = 0.5):
    # .detach() in the PyTorch forward only affects gradients; the forward
    # value is identical, so it is a no-op here.
    d_adv, g_adv = adversarial_loss(
        data_dict['real_scores'],
        data_dict['fake_scores_dis'],
        data_dict['fake_scores_gen'],
        pred_type=pred_type, weight=weight)
    losses_dict['D_ADV'] = d_adv
    losses_dict['G_ADV'] = g_adv
    return losses_dict


# --------------------------------------------------------------------------
# Pure-JAX reference + self-test
# --------------------------------------------------------------------------
def _reference(real, fdis, fgen, pred_type='ragan', weight=0.5):
    real = real.astype(jnp.float32)
    fdis = fdis.astype(jnp.float32)
    fgen = fgen.astype(jnp.float32)

    def get_preds(r, f):
        if pred_type == 'gan':
            return r, f
        if pred_type == 'rgan':
            return r - f, f - r
        return r - f.mean(), f - r.mean()

    rp, fp = get_preds(real, fdis)
    d = (jnp.maximum(1 - rp, 0).mean() + jnp.maximum(1 + fp, 0).mean()) * weight
    rp, fp = get_preds(real, fgen)
    if 'r' in pred_type:
        g = (jnp.maximum(1 - fp, 0).mean() + jnp.maximum(1 + rp, 0).mean()) * weight
    else:
        g = -fp.mean() * weight
    return d, g


if __name__ == "__main__":
    def make(shape, dtype=jnp.float32):
        k1, k2, k3 = jax.random.split(jax.random.PRNGKey(0), 3)
        return (jax.random.normal(k1, shape, dtype=dtype),
                jax.random.normal(k2, shape, dtype=dtype),
                jax.random.normal(k3, shape, dtype=dtype))

    # 1) module-default config through the dict-based forward (fused fast path)
    real, fdis, fgen = make((2, 4, 16, 16))
    losses = loss_wrapper_forward({'real_scores': real,
                                   'fake_scores_dis': fdis,
                                   'fake_scores_gen': fgen}, {})
    d = jax.block_until_ready(losses['D_ADV'])
    g = jax.block_until_ready(losses['G_ADV'])
    d_r, g_r = _reference(real, fdis, fgen, 'ragan', 0.5)
    assert jnp.allclose(d, d_r, atol=1e-5), (d, d_r)
    assert jnp.allclose(g, g_r, atol=1e-5), (g, g_r)

    # 2) all pred types, fused fast path, incl. an awkward non-128-multiple map
    for pt in ('gan', 'rgan', 'ragan'):
        for shp in ((2, 4, 16, 16), (2, 1, 30, 30)):
            r, fd, fg = make(shp)
            dk, gk = adversarial_loss(r, fd, fg, pred_type=pt, weight=0.5)
            dk, gk = jax.block_until_ready((dk, gk))
            dr, gr = _reference(r, fd, fg, pt, 0.5)
            assert jnp.allclose(dk, dr, atol=1e-5), (pt, shp, dk, dr)
            assert jnp.allclose(gk, gr, atol=1e-5), (pt, shp, gk, gr)

    # 3) streaming (tiled) path forced, incl. multi-tile and masked tail cases
    for pt in ('gan', 'rgan', 'ragan'):
        for shp in ((2, 4, 64, 64), (2, 1, 30, 30)):
            r, fd, fg = make(shp)
            dk, gk = adversarial_loss(r, fd, fg, pred_type=pt, weight=0.5,
                                      fused_max_bytes=0)
            dk, gk = jax.block_until_ready((dk, gk))
            dr, gr = _reference(r, fd, fg, pt, 0.5)
            assert jnp.allclose(dk, dr, atol=1e-5), (pt, shp, dk, dr)
            assert jnp.allclose(gk, gr, atol=1e-5), (pt, shp, gk, gr)

    # 4) bf16 passthrough (halves HBM traffic for the bandwidth-bound case)
    r, fd, fg = make((2, 4, 16, 16), jnp.bfloat16)
    dk, gk = adversarial_loss(r, fd, fg)
    dk, gk = jax.block_until_ready((dk, gk))
    dr, gr = _reference(r, fd, fg, 'ragan', 0.5)
    assert jnp.allclose(dk, dr, atol=1e-4), (dk, dr)
    assert jnp.allclose(gk, gr, atol=1e-4), (gk, gr)

    print("KERNEL_OK")
</pallas_src>

<mosaic_0001>
module attributes {stable_mosaic.version = 11 : i64} {
  func.func @_fused_kernel(%arg0: memref<16x128xf32, #tpu.memory_space<vmem>>, %arg1: memref<16x128xf32, #tpu.memory_space<vmem>>, %arg2: memref<16x128xf32, #tpu.memory_space<vmem>>, %arg3: memref<8x128xf32, #tpu.memory_space<vmem>>, %arg4: memref<8x128xf32, #tpu.memory_space<vmem>>) attributes {dimension_semantics = [], scalar_prefetch = 0 : i64, scratch_operands = 0 : i64, tpu.core_type = #tpu.core_type<tc>} {
    %c0 = arith.constant 0 : index
    %c0_0 = arith.constant 0 : index
    %0 = vector.load %arg0[%c0, %c0_0] : memref<16x128xf32, #tpu.memory_space<vmem>>, vector<16x128xf32>
    %c0_1 = arith.constant 0 : index
    %c0_2 = arith.constant 0 : index
    %1 = vector.load %arg1[%c0_1, %c0_2] : memref<16x128xf32, #tpu.memory_space<vmem>>, vector<16x128xf32>
    %c0_3 = arith.constant 0 : index
    %c0_4 = arith.constant 0 : index
    %2 = vector.load %arg2[%c0_3, %c0_4] : memref<16x128xf32, #tpu.memory_space<vmem>>, vector<16x128xf32>
    %3 = tpu.iota {dimensions = array<i32: 0>} : vector<16x128xi32>
    %4 = tpu.iota {dimensions = array<i32: 1>} : vector<16x128xi32>
    %c128_i32 = arith.constant 128 : i32
    %5 = vector.broadcast %c128_i32 : i32 to vector<16x128xi32>
    %6 = arith.muli %3, %5 : vector<16x128xi32>
    %7 = arith.addi %6, %4 : vector<16x128xi32>
    %c2048_i32 = arith.constant 2048 : i32
    %8 = vector.broadcast %c2048_i32 : i32 to vector<16x128xi32>
    %9 = arith.cmpi slt, %7, %8 : vector<16x128xi32>
    %cst = arith.constant 0.000000e+00 : f32
    %10 = vector.broadcast %cst : f32 to vector<16x128xf32>
    %11 = arith.select %9, %0, %10 : vector<16x128xi1>, vector<16x128xf32>
    %12 = vector.shape_cast %11 : vector<16x128xf32> to vector<1x16x128xf32>
    %cst_5 = arith.constant dense<0.000000e+00> : vector<1xf32>
    %13 = vector.multi_reduction <add>, %12, %cst_5 [1, 2] : vector<1x16x128xf32> to vector<1xf32>
    %14 = vector.shape_cast %13 : vector<1xf32> to vector<1x1x1xf32>
    %15 = vector.extract %14[0, 0, 0] : f32 from vector<1x1x1xf32>
    %cst_6 = arith.constant 4.8828125E-4 : f32
    %16 = arith.mulf %15, %cst_6 : f32
    %cst_7 = arith.constant 0.000000e+00 : f32
    %17 = vector.broadcast %cst_7 : f32 to vector<16x128xf32>
    %18 = arith.select %9, %1, %17 : vector<16x128xi1>, vector<16x128xf32>
    %19 = vector.shape_cast %18 : vector<16x128xf32> to vector<1x16x128xf32>
    %cst_8 = arith.constant dense<0.000000e+00> : vector<1xf32>
    %20 = vector.multi_reduction <add>, %19, %cst_8 [1, 2] : vector<1x16x128xf32> to vector<1xf32>
    %21 = vector.shape_cast %20 : vector<1xf32> to vector<1x1x1xf32>
    %22 = vector.extract %21[0, 0, 0] : f32 from vector<1x1x1xf32>
    %cst_9 = arith.constant 4.8828125E-4 : f32
    %23 = arith.mulf %22, %cst_9 : f32
    %cst_10 = arith.constant 0.000000e+00 : f32
    %24 = vector.broadcast %cst_10 : f32 to vector<16x128xf32>
    %25 = arith.select %9, %2, %24 : vector<16x128xi1>, vector<16x128xf32>
    %26 = vector.shape_cast %25 : vector<16x128xf32> to vector<1x16x128xf32>
    %cst_11 = arith.constant dense<0.000000e+00> : vector<1xf32>
    %27 = vector.multi_reduction <add>, %26, %cst_11 [1, 2] : vector<1x16x128xf32> to vector<1xf32>
    %28 = vector.shape_cast %27 : vector<1xf32> to vector<1x1x1xf32>
    %29 = vector.extract %28[0, 0, 0] : f32 from vector<1x1x1xf32>
    %cst_12 = arith.constant 4.8828125E-4 : f32
    %30 = arith.mulf %29, %cst_12 : f32
    %cst_13 = arith.constant 1.000000e+00 : f32
    %31 = arith.addf %cst_13, %23 : f32
    %32 = vector.broadcast %31 : f32 to vector<16x128xf32>
    %33 = arith.subf %32, %0 : vector<16x128xf32>
    %cst_14 = arith.constant 0.000000e+00 : f32
    %34 = vector.broadcast %cst_14 : f32 to vector<16x128xf32>
    %35 = arith.maximumf %33, %34 : vector<16x128xf32>
    %cst_15 = arith.constant 1.000000e+00 : f32
    %36 = arith.subf %cst_15, %16 : f32
    %37 = vector.broadcast %36 : f32 to vector<16x128xf32>
    %38 = arith.addf %37, %1 : vector<16x128xf32>
    %cst_16 = arith.constant 0.000000e+00 : f32
    %39 = vector.broadcast %cst_16 : f32 to vector<16x128xf32>
    %40 = arith.maximumf %38, %39 : vector<16x128xf32>
    %41 = arith.addf %35, %40 : vector<16x128xf32>
    %cst_17 = arith.constant 1.000000e+00 : f32
    %42 = arith.addf %cst_17, %16 : f32
    %43 = vector.broadcast %42 : f32 to vector<16x128xf32>
    %44 = arith.subf %43, %2 : vector<16x128xf32>
    %cst_18 = arith.constant 0.000000e+00 : f32
    %45 = vector.broadcast %cst_18 : f32 to vector<16x128xf32>
    %46 = arith.maximumf %44, %45 : vector<16x128xf32>
    %cst_19 = arith.constant 1.000000e+00 : f32
    %47 = arith.subf %cst_19, %30 : f32
    %48 = vector.broadcast %47 : f32 to vector<16x128xf32>
    %49 = arith.addf %48, %0 : vector<16x128xf32>
    %cst_20 = arith.constant 0.000000e+00 : f32
    %50 = vector.broadcast %cst_20 : f32 to vector<16x128xf32>
    %51 = arith.maximumf %49, %50 : vector<16x128xf32>
    %52 = arith.addf %46, %51 : vector<16x128xf32>
    %cst_21 = arith.constant 0.000000e+00 : f32
    %53 = vector.broadcast %cst_21 : f32 to vector<16x128xf32>
    %54 = arith.select %9, %41, %53 : vector<16x128xi1>, vector<16x128xf32>
    %55 = vector.shape_cast %54 : vector<16x128xf32> to vector<2x8x128xf32>
    %cst_22 = arith.constant dense<0.000000e+00> : vector<8x128xf32>
    %56 = vector.multi_reduction <add>, %55, %cst_22 [0] : vector<2x8x128xf32> to vector<8x128xf32>
    %c0_23 = arith.constant 0 : index
    %c0_24 = arith.constant 0 : index
    %57 = vector.load %arg3[%c0_23, %c0_24] : memref<8x128xf32, #tpu.memory_space<vmem>>, vector<8x128xf32>
    tpu.vector_store %arg3[%c0_23, %c0_24], %56 {strides = array<i32>} : memref<8x128xf32, #tpu.memory_space<vmem>>, vector<8x128xf32>,
    %cst_25 = arith.constant 0.000000e+00 : f32
    %58 = vector.broadcast %cst_25 : f32 to vector<16x128xf32>
    %59 = arith.select %9, %52, %58 : vector<16x128xi1>, vector<16x128xf32>
    %60 = vector.shape_cast %59 : vector<16x128xf32> to vector<2x8x128xf32>
    %cst_26 = arith.constant dense<0.000000e+00> : vector<8x128xf32>
    %61 = vector.multi_reduction <add>, %60, %cst_26 [0] : vector<2x8x128xf32> to vector<8x128xf32>
    %c0_27 = arith.constant 0 : index
    %c0_28 = arith.constant 0 : index
    %62 = vector.load %arg4[%c0_27, %c0_28] : memref<8x128xf32, #tpu.memory_space<vmem>>, vector<8x128xf32>
    tpu.vector_store %arg4[%c0_27, %c0_28], %61 {strides = array<i32>} : memref<8x128xf32, #tpu.memory_space<vmem>>, vector<8x128xf32>,
    return
  }
}

</mosaic_0001>

<bundles_post_ra>
// kernel: adversarial_loss.1
= control target key start
LH: loop header
LB: loop body
LE: loop exit
PB: predicated region body
PF: predicated region fallthrough
CT: control target
= control target key end

     0   :  { %v22_v0 = vlaneseq  ;;  %s202_s2 = inlined_call_operand.vmem [shape: f32[16,128], index: 2, kind: input, shape index: {}]   ;;  %s203_s0 = inlined_call_operand.vmem [shape: f32[16,128], index: 0, kind: input, shape index: {}]   ;;  %s204_s1 = inlined_call_operand.vmem [shape: f32[16,128], index: 1, kind: input, shape index: {}]   ;;  %s205_s3 = inlined_call_operand.vmem [shape: f32[8,128], index: 3, kind: output, shape index: {0}]   ;;  %s206_s4 = inlined_call_operand.vmem [shape: f32[8,128], index: 4, kind: output, shape index: {1}]  }
   0x1   :  { %v20_v5 = vld [vmem:[%s202_s2] sm:$0xff]  ;;  %v21_v9 = vld [vmem:[%s202_s2 + $0x8] sm:$0xff] }
   0x2   :  { %v23_v1 = vshrl.u32 %v22_v0, 7  ;;  %v26_v2 = vand.u32 127, %v22_v0  ;;  %v155_v8 = vld [vmem:[%s203_s0] sm:$0xff]  ;;  %v17_v11 = vld [vmem:[%s203_s0 + $0x8] sm:$0xff] }
   0x3   :  { %v18_v12 = vld [vmem:[%s204_s1] sm:$0xff]  ;;  %v19_v13 = vld [vmem:[%s204_s1 + $0x8] sm:$0xff] }
   0x4   :  { %v24_v3 = vadd.s32 8, %v23_v1  ;;  %v27_v4 = vmul.u32 128, %v23_v1 }
   0x6   :  { %v28_v6 = vmul.u32 128, %v24_v3  ;;  %v150_v7 = vadd.s32 %v27_v4, %v26_v2 }
   0x8   :  { %v160_v10 = vadd.s32 %v28_v6, %v26_v2  ;;  %vm31_vm0 = vcmp.lt.s32.totalorder %v150_v7, 2048 }
   0x9   :  { %v59_v14 = vsel %vm31_vm0, %v20_v5, 0.0  ;;  %v33_v15 = vsel %vm31_vm0, %v155_v8, 0.0  ;;  %v46_v18 = vsel %vm31_vm0, %v18_v12, 0.0 }
   0xa   :  { %vm32_vm1 = vcmp.lt.s32.totalorder %v160_v10, 2048 }
   0xb   :  { %v60_v16 = vsel %vm32_vm1, %v21_v9, 0.0  ;;  %v34_v17 = vsel %vm32_vm1, %v17_v11, 0.0  ;;  %v47_v19 = vsel %vm32_vm1, %v19_v13, 0.0 }
   0xc   :  { %v61_v20 = vadd.f32 %v60_v16, %v59_v14  ;;  %v35_v21 = vadd.f32 %v34_v17, %v33_v15  ;;  %v48_v22 = vadd.f32 %v47_v19, %v46_v18 }
   0xe   :  { %62 = vadd.xlane.f32.xlu1 %v61_v20  ;;  %36 = vadd.xlane.f32.xlu0 %v35_v21 }
  0x12   :  { %49 = vadd.xlane.f32.xlu0 %v48_v22 }
  0x9b   :  { %v63_v23 = vpop.xlane.xlu1 %62  ;;  %v37_v24 = vpop.xlane.xlu0 %36 }
  0x9c   :  { %v64_v25 = vrot.slane %v63_v23, 4  ;;  %v38_v26 = vrot.slane %v37_v24, 4 }
  0x9e   :  { %v65_v27 = vadd.f32 %v64_v25, %v63_v23  ;;  %v39_v28 = vadd.f32 %v38_v26, %v37_v24 }
  0x9f   :  { %v50_v29 = vpop.xlane.xlu0 %49 }
  0xa0   :  { %v66_v30 = vrot.slane %v65_v27, 2  ;;  %v40_v31 = vrot.slane %v39_v28, 2  ;;  %v51_v32 = vrot.slane %v50_v29, 4 }
  0xa2   :  { %v52_v33 = vadd.f32 %v51_v32, %v50_v29  ;;  %v41_v34 = vadd.f32 %v40_v31, %v39_v28  ;;  %v67_v35 = vadd.f32 %v66_v30, %v65_v27 }
  0xa4   :  { %v53_v36 = vrot.slane %v52_v33, 2  ;;  %v42_v37 = vrot.slane %v41_v34, 1  ;;  %v68_v40 = vrot.slane %v67_v35, 1 }
  0xa6   :  { %v54_v38 = vadd.f32 %v53_v36, %v52_v33  ;;  %v43_v39 = vadd.f32 %v42_v37, %v41_v34  ;;  %v69_v43 = vadd.f32 %v68_v40, %v67_v35 }
  0xa8   :  { %116 = vpush %v43_v39  ;;  %v55_v41 = vrot.slane %v54_v38, 1 }
  0xaa   :  { %v56_v42 = vadd.f32 %v55_v41, %v54_v38 }
  0xac   :  { %118 = vpush %v56_v42 }
  0xad   :  { %120 = vpush %v69_v43 }
  0xd9   :  { %s117_s0 = spop %116 }
  0xda   :  { %s45_s1 = smul.f32 0.00048828125, %s117_s0 }
  0xdc   :  { %s78_s2 = ssub.f32 1.0, %s45_s1 }
  0xdd   :  { %s86_s27 = sadd.f32 1.0, %s45_s1  ;;  %s119_s28 = spop %118 }
  0xde   :  { %v79_v44 = vstv %s78_s2  ;;  %s58_s29 = smul.f32 0.00048828125, %s119_s28  ;;  %s121_s30 = spop %120 }
  0xdf   :  { %v87_v45 = vstv %s86_s27  ;;  %s71_s5 = smul.f32 0.00048828125, %s121_s30  ;;  %v80_v46 = vadd.f32 %v79_v44, %v18_v12  ;;  %v81_v47 = vadd.f32 %v79_v44, %v19_v13 }
  0xe0   :  { %s72_s6 = sadd.f32 1.0, %s58_s29  ;;  %v88_v48 = vsub.f32 %v87_v45, %v20_v5  ;;  %v89_v49 = vsub.f32 %v87_v45, %v21_v9 }
  0xe1   :  { %s92_s7 = ssub.f32 1.0, %s71_s5  ;;  %v82_v56 = vmax.f32 %v80_v46, 0.0  ;;  %v83_v57 = vmax.f32 %v81_v47, 0.0 }
  0xe2   :  { %v73_v50 = vstv %s72_s6  ;;  %v90_v60 = vmax.f32 %v88_v48, 0.0  ;;  %v91_v61 = vmax.f32 %v89_v49, 0.0 }
  0xe3   :  { %v74_v51 = vsub.f32 %v73_v50, %v155_v8  ;;  %v75_v52 = vsub.f32 %v73_v50, %v17_v11  ;;  %v93_v53 = vstv %s92_s7 }
  0xe4   :  { %v94_v54 = vadd.f32 %v93_v53, %v155_v8  ;;  %v95_v55 = vadd.f32 %v93_v53, %v17_v11 }
  0xe5   :  { %v76_v58 = vmax.f32 %v74_v51, 0.0  ;;  %v77_v59 = vmax.f32 %v75_v52, 0.0 }
  0xe6   :  { %v96_v62 = vmax.f32 %v94_v54, 0.0  ;;  %v97_v63 = vmax.f32 %v95_v55, 0.0 }
  0xe7   :  { %v84_v0 = vadd.f32 %v82_v56, %v76_v58  ;;  %v85_v1 = vadd.f32 %v83_v57, %v77_v59 }
  0xe8   :  { %v98_v2 = vadd.f32 %v96_v62, %v90_v60  ;;  %v99_v3 = vadd.f32 %v97_v63, %v91_v61 }
  0xe9   :  { %v100_v4 = vsel %vm31_vm0, %v84_v0, 0.0  ;;  %v101_v5 = vsel %vm32_vm1, %v85_v1, 0.0 }
  0xea   :  { %v102_v6 = vadd.f32 %v101_v5, %v100_v4  ;;  %v104_v8 = vsel %vm31_vm0, %v98_v2, 0.0  ;;  %v105_v9 = vsel %vm32_vm1, %v99_v3, 0.0 }
  0xeb   :  { %v106_v11 = vadd.f32 %v105_v9, %v104_v8 }
  0xec   :  { %103 = vst [vmem:[%s205_s3] sm:$0xff] %v102_v6 }
  0xed   :  { %107 = vst [vmem:[%s206_s4] sm:$0xff] %v106_v11 }

</bundles_post_ra>
